<compile_context>
chip_gen: v7x
topology: tpu7x:2x2x1
jax: 0.10.0
libtpu: 0.0.40
codegen_flags: <defaults>
</compile_context>

<pallas_src>
import jax
import jax.numpy as jnp
from jax.experimental import pallas as pl
from jax.experimental.pallas import tpu as pltpu


def _round_up(n, m):
    return ((n + m - 1) // m) * m


def _head_kernel(x_ref, w_ref, b_ref, o_ref, acc_ref):
    """One (TILE_B, TILE_K) x (TILE_K, C) partial matmul; reduce over grid axis 1."""
    k = pl.program_id(1)

    @pl.when(k == 0)
    def _():
        acc_ref[...] = jnp.zeros_like(acc_ref)

    # MXU matmul, f32 accumulation regardless of input dtype.
    acc_ref[...] += jnp.dot(x_ref[...], w_ref[...],
                            preferred_element_type=jnp.float32)

    @pl.when(k == pl.num_programs(1) - 1)
    def _():
        out = acc_ref[...] + b_ref[...].astype(jnp.float32)   # (TILE_B, C) + (1, C)
        o_ref[...] = out.astype(o_ref.dtype)


def classification_head(x, weight, bias, *, tile_b=128, tile_k=512):
    """
    x:      (bs, n_vars, d_model, num_patch)
    weight: (n_classes, n_vars * d_model)   -- torch nn.Linear layout
    bias:   (n_classes,)
    returns (bs, n_classes)
    """
    B, V, D, P = x.shape
    K = V * D
    C, K_w = weight.shape
    assert K_w == K and bias.shape == (C,)

    # TODO(synk): nn.Dropout is identity at inference; stochastic training-mode
    #             dropout is not implemented in the kernel.

    # Last patch + flatten -> lane-dense (B, K) slab for the kernel.
    xf = x[:, :, :, -1].reshape(B, K)
    wt = weight.T                         # (K, C)
    b2 = bias.reshape(1, C)

    # Tile sizes: multiples of (8, 128); capped so double-buffered blocks stay
    # a few MiB (safe for v7x's 64 MiB VMEM and v5e's 16 MiB scoped default).
    tb = min(tile_b, _round_up(B, 8))
    tk = min(tile_k, _round_up(K, 128))

    Bp = _round_up(B, tb)
    Kp = _round_up(K, tk)
    if Bp != B or Kp != K:
        xf = jnp.pad(xf, ((0, Bp - B), (0, Kp - K)))
    if Kp != K:
        wt = jnp.pad(wt, ((0, Kp - K), (0, 0)))

    grid = (Bp // tb, Kp // tk)

    out = pl.pallas_call(
        _head_kernel,
        out_shape=jax.ShapeDtypeStruct((Bp, C), x.dtype),
        grid_spec=pltpu.PrefetchScalarGridSpec(
            num_scalar_prefetch=0,
            grid=grid,
            in_specs=[
                pl.BlockSpec((tb, tk), lambda i, k: (i, k)),   # activations
                pl.BlockSpec((tk, C), lambda i, k: (k, 0)),    # weight slab
                pl.BlockSpec((1, C), lambda i, k: (0, 0)),     # bias (DMA'd once)
            ],
            out_specs=pl.BlockSpec((tb, C), lambda i, k: (i, 0)),
            scratch_shapes=[pltpu.VMEM((tb, C), jnp.float32)],
        ),
        compiler_params=pltpu.CompilerParams(
            # Row tiles are independent (shardable across v7x's 2 TCs);
            # K is the reduction axis and must stay "arbitrary".
            dimension_semantics=("parallel", "arbitrary"),
            vmem_limit_bytes=64 * 1024 * 1024,
        ),
    )(xf, wt, b2)

    return out[:B]


def _reference(x, weight, bias):
    xl = x[:, :, :, -1].reshape(x.shape[0], -1)
    return xl @ weight.T + bias


if __name__ == "__main__":
    key = jax.random.PRNGKey(0)
    bs, n_vars, d_model, num_patch = 8, 4, 32, 16
    n_classes = 10

    kx, kw, kb = jax.random.split(key, 3)
    x = jax.random.normal(kx, (bs, n_vars, d_model, num_patch), dtype=jnp.float32)

    # Deterministic PyTorch-style Linear init: U(-1/sqrt(fan_in), 1/sqrt(fan_in))
    fan_in = n_vars * d_model
    bound = 1.0 / (fan_in ** 0.5)
    weight = jax.random.uniform(kw, (n_classes, fan_in),
                                minval=-bound, maxval=bound, dtype=jnp.float32)
    bias = jax.random.uniform(kb, (n_classes,),
                              minval=-bound, maxval=bound, dtype=jnp.float32)

    out = classification_head(x, weight, bias)
    jax.block_until_ready(out)

    ref = _reference(x, weight, bias)
    assert out.shape == (bs, n_classes)
    assert jnp.allclose(out, ref, atol=1e-5, rtol=1e-5), "mismatch vs reference"

    print("KERNEL_OK")
</pallas_src>

<mosaic_0001>
module attributes {stable_mosaic.version = 11 : i64} {
  func.func @_head_kernel(%arg0: i32, %arg1: i32, %arg2: memref<8x128xf32, #tpu.memory_space<vmem>>, %arg3: memref<128x10xf32, #tpu.memory_space<vmem>>, %arg4: memref<1x10xf32, #tpu.memory_space<vmem>>, %arg5: memref<8x10xf32, #tpu.memory_space<vmem>>, %arg6: memref<8x10xf32, #tpu.memory_space<vmem>>) attributes {dimension_semantics = [#tpu.dimension_semantics<parallel>, #tpu.dimension_semantics<arbitrary>], iteration_bounds = array<i64: 1, 1>, scalar_prefetch = 0 : i64, scratch_operands = 1 : i64, tpu.core_type = #tpu.core_type<tc>, window_params = [{transform_indices = @transform_0, window_bounds = array<i64: 8, 128>}, {transform_indices = @transform_1, window_bounds = array<i64: 128, 10>}, {pipeline_mode = #tpu.pipeline_mode<synchronous>, transform_indices = @transform_2, window_bounds = array<i64: 1, 10>}, {transform_indices = @transform_3, window_bounds = array<i64: 8, 10>}]} {
    %c0_i32 = arith.constant 0 : i32
    %0 = arith.cmpi eq, %arg1, %c0_i32 : i32
    %1 = arith.extui %0 : i1 to i32
    %c0_i32_0 = arith.constant 0 : i32
    %2 = arith.cmpi ne, %1, %c0_i32_0 : i32
    scf.if %2 {
      %cst_10 = arith.constant 0.000000e+00 : f32
      %12 = vector.broadcast %cst_10 : f32 to vector<8x10xf32>
      %c0_11 = arith.constant 0 : index
      %c0_12 = arith.constant 0 : index
      %13 = vector.load %arg6[%c0_11, %c0_12] : memref<8x10xf32, #tpu.memory_space<vmem>>, vector<8x10xf32>
      tpu.vector_store %arg6[%c0_11, %c0_12], %12 {strides = array<i32>} : memref<8x10xf32, #tpu.memory_space<vmem>>, vector<8x10xf32>,
    } else {
    }
    %c0 = arith.constant 0 : index
    %c0_1 = arith.constant 0 : index
    %3 = vector.load %arg6[%c0, %c0_1] : memref<8x10xf32, #tpu.memory_space<vmem>>, vector<8x10xf32>
    %c0_2 = arith.constant 0 : index
    %c0_3 = arith.constant 0 : index
    %4 = vector.load %arg2[%c0_2, %c0_3] : memref<8x128xf32, #tpu.memory_space<vmem>>, vector<8x128xf32>
    %c0_4 = arith.constant 0 : index
    %c0_5 = arith.constant 0 : index
    %5 = vector.load %arg3[%c0_4, %c0_5] : memref<128x10xf32, #tpu.memory_space<vmem>>, vector<128x10xf32>
    %cst = arith.constant dense<0.000000e+00> : vector<8x10xf32>
    %6 = tpu.matmul %4, %5, %cst {dimension_numbers = #tpu.dot_dimension_numbers<[1], [0], [0], [1], [0, 0, 1, 1], [], []>} : vector<8x128xf32>, vector<128x10xf32>, vector<8x10xf32> -> vector<8x10xf32>
    %7 = arith.addf %3, %6 : vector<8x10xf32>
    %c0_6 = arith.constant 0 : index
    %c0_7 = arith.constant 0 : index
    %8 = vector.load %arg6[%c0_6, %c0_7] : memref<8x10xf32, #tpu.memory_space<vmem>>, vector<8x10xf32>
    tpu.vector_store %arg6[%c0_6, %c0_7], %7 {strides = array<i32>} : memref<8x10xf32, #tpu.memory_space<vmem>>, vector<8x10xf32>,
    %c0_i32_8 = arith.constant 0 : i32
    %9 = arith.cmpi eq, %arg1, %c0_i32_8 : i32
    %10 = arith.extui %9 : i1 to i32
    %c0_i32_9 = arith.constant 0 : i32
    %11 = arith.cmpi ne, %10, %c0_i32_9 : i32
    scf.if %11 {
      %c0_10 = arith.constant 0 : index
      %c0_11 = arith.constant 0 : index
      %12 = vector.load %arg6[%c0_10, %c0_11] : memref<8x10xf32, #tpu.memory_space<vmem>>, vector<8x10xf32>
      %c0_12 = arith.constant 0 : index
      %c0_13 = arith.constant 0 : index
      %13 = vector.load %arg4[%c0_12, %c0_13] : memref<1x10xf32, #tpu.memory_space<vmem>>, vector<1x10xf32>
      %14 = vector.broadcast %13 : vector<1x10xf32> to vector<8x10xf32>
      %15 = arith.addf %12, %14 : vector<8x10xf32>
      %c0_14 = arith.constant 0 : index
      %c0_15 = arith.constant 0 : index
      %16 = vector.load %arg5[%c0_14, %c0_15] : memref<8x10xf32, #tpu.memory_space<vmem>>, vector<8x10xf32>
      tpu.vector_store %arg5[%c0_14, %c0_15], %15 {strides = array<i32>} : memref<8x10xf32, #tpu.memory_space<vmem>>, vector<8x10xf32>,
    } else {
    }
    return
  }
  func.func @transform_0(%arg0: i32, %arg1: i32) -> (i32, i32) {
    %c0_i32 = arith.constant 0 : i32
    return %arg0, %arg1 : i32, i32
  }
  func.func @transform_1(%arg0: i32, %arg1: i32) -> (i32, i32) {
    %c0_i32 = arith.constant 0 : i32
    %c0_i32_0 = arith.constant 0 : i32
    return %arg1, %c0_i32 : i32, i32
  }
  func.func @transform_2(%arg0: i32, %arg1: i32) -> (i32, i32) {
    %c0_i32 = arith.constant 0 : i32
    %c0_i32_0 = arith.constant 0 : i32
    %c0_i32_1 = arith.constant 0 : i32
    return %c0_i32, %c0_i32_0 : i32, i32
  }
  func.func @transform_3(%arg0: i32, %arg1: i32) -> (i32, i32) {
    %c0_i32 = arith.constant 0 : i32
    %c0_i32_0 = arith.constant 0 : i32
    return %arg0, %c0_i32 : i32, i32
  }
}

</mosaic_0001>

<bundles_post_ra>
// kernel: tpu_custom_call.1
= control target key start
LH: loop header
LB: loop body
LE: loop exit
PB: predicated region body
PF: predicated region fallthrough
CT: control target
= control target key end

     0   :  { %8 = vsyncpa [#allocation4], 0  ;;  %s438_s0 = inlined_call_operand.hbm [shape: f32[8,128], index: 0, kind: input, shape index: {}]   ;;  %s439_s1 = inlined_call_operand.hbm [shape: f32[128,10], index: 1, kind: input, shape index: {}]   ;;  %s440_s2 = inlined_call_operand.hbm [shape: f32[1,10], index: 2, kind: input, shape index: {}]   ;;  %s441_s3 = inlined_call_operand.hbm [shape: f32[8,10], index: 3, kind: output, shape index: {}]  }
   0x1   :  { %9 = vsyncpa [#allocation7], 0 }
   0x2   :  { %10 = vsyncpa [#allocation5], 0  ;;  %s358_s12 = smov [#allocation6]   ;;  %s264_s16 = scalar_lea.hbm %s439_s1, 2048 }
   0x3   :  { %s26_s13 = sshll.u32 %s358_s12, 4  ;;  %p265_p0 = scmp.ne.s32.totalorder %s439_s1, %s264_s16  ;;  %s27_s13 = int_to_ptr.vmem [resolvable:$true] %s26_s13 }
   0x4   :  { %p268_p1 = scmp.lt.u32.totalorder %s264_s16, %s439_s1 }
   0x6   :  { %p270_p2 = pnand %p268_p1, %p265_p0 }
   0x8   :  { %273 = shalt.err (!%p270_p2)
}
   0x9   :  { %s274_s21 = scalar_lea.vmem %s27_s13, 2048  ;;  %p279_p4 = scmp.lt.s32.totalorder %s27_s13, %s27_s13 }
   0xa   :  { %p275_p3 = scmp.ne.s32.totalorder %s27_s13, %s274_s21  ;;  %p280_p5 = scmp.lt.s32.totalorder %s274_s21, %s274_s21 }
   0xc   :  { %p281_p6 = por %p280_p5, %p279_p4 }
   0xe   :  { %p282_p7 = pnand %p281_p6, %p275_p3 }
  0x10   :  { %285 = shalt.err (!%p282_p7)
}
  0x11   :  { %s359_s22 = smov 128   ;;  %s360_s23 = smov 8  }
  0x12   :  { %32 = dma.hbm_to_vmem [thread:$0]  %s439_s1, 2048, %s27_s13, [#allocation7], %s359_s22, %s359_s22, %s360_s23  }
  0x13   :  { %s361_s26 = smov [#allocation3]   ;;  %s362_s28 = smov [#allocation8]  }
  0x14   :  { %s17_s27 = sshll.u32 %s361_s26, 4  ;;  %s39_s29 = sshll.u32 %s362_s28, 4  ;;  %s18_s27 = int_to_ptr.vmem [resolvable:$true] %s17_s27  ;;  %s40_s29 = int_to_ptr.vmem [resolvable:$true] %s39_s29 }
  0x15   :  { %s286_s5 = scalar_lea.hbm %s438_s0, 128 }
  0x16   :  { %p287_p8 = scmp.ne.s32.totalorder %s438_s0, %s286_s5  ;;  %p290_p9 = scmp.lt.u32.totalorder %s286_s5, %s438_s0 }
  0x18   :  { %p292_p10 = pnand %p290_p9, %p287_p8 }
  0x1a   :  { %295 = shalt.err (!%p292_p10)
}
  0x1b   :  { %s296_s1 = scalar_lea.vmem %s18_s27, 128  ;;  %p301_p12 = scmp.lt.s32.totalorder %s18_s27, %s18_s27 }
  0x1c   :  { %p297_p11 = scmp.ne.s32.totalorder %s18_s27, %s296_s1  ;;  %p302_p13 = scmp.lt.s32.totalorder %s296_s1, %s296_s1 }
  0x1e   :  { %p303_p0 = por %p302_p13, %p301_p12 }
  0x20   :  { %p304_p1 = pnand %p303_p0, %p297_p11 }
  0x22   :  { %307 = shalt.err (!%p304_p1)
}
  0x23   :  { %20 = dma.hbm_to_vmem [thread:$0]  %s438_s0, 128, %s18_s27, [#allocation4]  }
  0x24   :  { %s308_s14 = scalar_lea.hbm %s440_s2, 16 }
  0x25   :  { %p309_p2 = scmp.ne.s32.totalorder %s440_s2, %s308_s14  ;;  %p312_p3 = scmp.lt.u32.totalorder %s308_s14, %s440_s2 }
  0x27   :  { %p314_p4 = pnand %p312_p3, %p309_p2 }
  0x29   :  { %317 = shalt.err (!%p314_p4)
}
  0x2a   :  { %s318_s19 = scalar_lea.vmem %s40_s29, 16  ;;  %s322_s20 = scalar_lea.vmem %s40_s29, 32 }
  0x2b   :  { %p319_p5 = scmp.ne.s32.totalorder %s40_s29, %s318_s19  ;;  %p323_p6 = scmp.lt.s32.totalorder %s40_s29, %s40_s29 }
  0x2c   :  { %p324_p7 = scmp.lt.s32.totalorder %s322_s20, %s318_s19 }
  0x2e   :  { %p325_p8 = por %p324_p7, %p323_p6 }
  0x30   :  { %p326_p9 = pnand %p325_p8, %p319_p5 }
  0x32   :  { %329 = shalt.err (!%p326_p9)
}
  0x33   :  { %42 = dma.hbm_to_vmem [thread:$0]  %s440_s2, 16, %s40_s29, [#allocation7]  }
  0x34   :  { %352 = dma.done.wait [#allocation4], 128  }
  0x35   :  { %353 = vsyncadd [#allocation4], 4294967168 }
  0x36   :  { %354 = dma.done.wait [#allocation7], 2064  }
  0x37   :  { %355 = vsyncadd [#allocation7], 4294965232  ;;  %vm56_vm0 = vcmask 80896   ;;  %v363_v0 = vmov 0.0|0.0   ;;  %v364_v1 = vmov 0.0   ;;  %vm365_vm1 = vmmov 0  }
  0x38   :  { %231 = vmatprep.subr.bf16.mxu0 %v363_v0  ;;  %57 = vst.msk [vmem:[#allocation2] sm:$0xff] %vm56_vm0, %v364_v1  ;;  %228 = vmatprep.mubr.msk.f32.mxu0 %vm365_vm1, %v364_v1  ;;  %v60_v2 = vld [vmem:[#allocation6] sm:$0xff]  ;;  %v61_v3 = vld [vmem:[#allocation6 + $0x8] sm:$0xff]  ;;  %v62_v4 = vld [vmem:[#allocation6 + $0x10] sm:$0xff]  ;;  %s366_s2 = smov [#allocation9]  }
  0x39   :  { %v232_v5 = vpack.c.bf16 %v61_v3, %v60_v2  ;;  %v63_v6 = vld [vmem:[#allocation6 + $0x18] sm:$0xff]  ;;  %v64_v8 = vld [vmem:[#allocation6 + $0x20] sm:$0xff]  ;;  %v65_v9 = vld [vmem:[#allocation6 + $0x28] sm:$0xff]  ;;  %s168_s22 = sshll.u32 %s366_s2, 4  ;;  %s169_s22 = int_to_ptr.vmem [resolvable:$true] %s168_s22 }
  0x3a   :  { %v235_v7 = vpack.c.bf16 %v63_v6, %v62_v4  ;;  %v238_v10 = vpack.c.bf16 %v65_v9, %v64_v8  ;;  %v66_v11 = vld [vmem:[#allocation6 + $0x30] sm:$0xff]  ;;  %v67_v12 = vld [vmem:[#allocation6 + $0x38] sm:$0xff]  ;;  %v68_v14 = vld [vmem:[#allocation6 + $0x40] sm:$0xff]  ;;  %s330_s23 = scalar_lea.vmem %s169_s22, 128  ;;  %p335_p11 = scmp.lt.s32.totalorder %s169_s22, %s169_s22 }
  0x3b   :  { %233 = vmatpush3.bf16.msra.mxu0 %v232_v5  ;;  %v241_v13 = vpack.c.bf16 %v67_v12, %v66_v11  ;;  %v69_v15 = vld [vmem:[#allocation6 + $0x48] sm:$0xff]  ;;  %v70_v17 = vld [vmem:[#allocation6 + $0x50] sm:$0xff]  ;;  %v71_v18 = vld [vmem:[#allocation6 + $0x58] sm:$0xff]  ;;  %p331_p10 = scmp.ne.s32.totalorder %s169_s22, %s330_s23  ;;  %p336_p12 = scmp.lt.s32.totalorder %s330_s23, %s330_s23 }
  0x3c   :  { %234 = vmatprep.subr.bf16.mxu0 %v363_v0  ;;  %v244_v16 = vpack.c.bf16 %v69_v15, %v68_v14  ;;  %v247_v19 = vpack.c.bf16 %v71_v18, %v70_v17  ;;  %v72_v20 = vld [vmem:[#allocation6 + $0x60] sm:$0xff]  ;;  %v73_v21 = vld [vmem:[#allocation6 + $0x68] sm:$0xff]  ;;  %v74_v23 = vld [vmem:[#allocation6 + $0x70] sm:$0xff] }
  0x3d   :  { %v250_v22 = vpack.c.bf16 %v73_v21, %v72_v20  ;;  %v75_v24 = vld [vmem:[#allocation6 + $0x78] sm:$0xff]  ;;  %v178_v31 = vld [vmem:[#allocation8] ss:$0 sm:$0xff]  ;;  %p337_p13 = por %p336_p12, %p335_p11 }
  0x3e   :  { %v253_v25 = vpack.c.bf16 %v75_v24, %v74_v23  ;;  %v59_v26 = vld [vmem:[#allocation3] sm:$0xff] }
  0x3f   :  { %236 = vmatpush3.bf16.msra.mxu0 %v235_v7  ;;  %v58_v27 = vld [vmem:[#allocation2] sm:$0xff]  ;;  %p338_p0 = pnand %p337_p13, %p331_p10 }
  0x40   :  { %237 = vmatprep.subr.bf16.mxu0 %v363_v0 }
  0x43   :  { %239 = vmatpush3.bf16.msra.mxu0 %v238_v10 }
  0x44   :  { %240 = vmatprep.subr.bf16.mxu0 %v363_v0 }
  0x47   :  { %242 = vmatpush3.bf16.msra.mxu0 %v241_v13 }
  0x48   :  { %243 = vmatprep.subr.bf16.mxu0 %v363_v0 }
  0x4b   :  { %245 = vmatpush3.bf16.msra.mxu0 %v244_v16 }
  0x4c   :  { %246 = vmatprep.subr.bf16.mxu0 %v363_v0 }
  0x4f   :  { %248 = vmatpush3.bf16.msra.mxu0 %v247_v19 }
  0x50   :  { %249 = vmatprep.subr.bf16.mxu0 %v363_v0 }
  0x53   :  { %251 = vmatpush3.bf16.msra.mxu0 %v250_v22 }
  0x54   :  { %252 = vmatprep.subr.bf16.mxu0 %v363_v0 }
  0x57   :  { %254 = vmatpush3.bf16.msra.mxu0 %v253_v25 }
  0x5a   :  { %229 = vmatmul.mubr.f32.vlgmr.msra.gmra.mrb[0].mxu0 %v59_v26 }
 0x12d   :  { %v142_v28 = vpop.f32.mrb[0].mxu0 }
 0x12e   :  { %v146_v29 = vadd.f32 %v142_v28, %v58_v27  ;;  %v230_v30 = vpop.f32.mrb[1].mxu0 }
 0x130   :  { %148 = vst.msk [vmem:[#allocation2] sm:$0xff] %vm56_vm0, %v146_v29 }
 0x137   :  { %v152_v32 = vld [vmem:[#allocation2] sm:$0xff] }
 0x138   :  { %v160_v33 = vadd.f32 %v178_v31, %v152_v32 }
 0x13a   :  { %161 = vst.msk [vmem:[#allocation9] sm:$0xff] %vm56_vm0, %v160_v33 }
 0x13b   :  { %341 = shalt.err (!%p338_p0)
}
 0x13c   :  { %s342_s26 = scalar_lea.hbm %s441_s3, 128 }
 0x13d   :  { %p343_p1 = scmp.ne.s32.totalorder %s441_s3, %s342_s26  ;;  %p346_p2 = scmp.lt.u32.totalorder %s342_s26, %s441_s3 }
 0x13f   :  { %p348_p3 = pnand %p346_p2, %p343_p1 }
 0x141   :  { %351 = shalt.err (!%p348_p3)
}
 0x142   :  { %171 = dma.vmem_to_hbm [thread:$0]  %s169_s22, 128, %s441_s3, [#allocation5]  }
 0x143   :  { %356 = dma.done.wait [#allocation5], 128  }
 0x144   :  { %357 = vsyncadd [#allocation5], 4294967168 }
 0x145   :  { %175 = vsyncpa [#allocation4], 1 }
 0x146   :  { %176 = vsyncpa [#allocation7], 1 }
 0x147   :  { %177 = vsyncpa [#allocation5], 1 }

</bundles_post_ra>
